<compile_context>
chip_gen: v5e
topology: v5e:2x2
jax: 0.10.0
libtpu: 0.0.40
codegen_flags: <defaults>
</compile_context>

<pallas_src>
import functools
import math

import jax
import jax.numpy as jnp
from jax.experimental import pallas as pl
from jax.experimental.pallas import tpu as pltpu

BF16 = jnp.bfloat16

_VMEM_BUDGET = 40 * 1024 * 1024     # working-set target (fits v7x 64 MiB with headroom)
_VMEM_LIMIT = 48 * 1024 * 1024      # explicit scoped-VMEM limit for the big kernels


# ------------------------------ helpers -------------------------------------

def _round_up(x, m):
    return (x + m - 1) // m * m


def _pick_div_tile(n, cap, candidates=(512, 256, 128, 64, 32, 16, 8)):
    """Largest candidate <= cap that divides n; fall back to n (whole dim)."""
    for t in candidates:
        if t <= cap and t <= n and n % t == 0:
            return t
    return n


def _pad_rows(x2d, m_pad):
    M = x2d.shape[0]
    if m_pad == M:
        return x2d
    return jnp.pad(x2d, ((0, m_pad - M), (0, 0)))


# --------------------------- linear kernels ----------------------------------

def _matmul_kernel(x_ref, w_ref, o_ref):
    # x: (tm, K) bf16, w: (tn, K) bf16 (PyTorch layout) -> o: (tm, tn), f32 MXU acc.
    o_ref[...] = jax.lax.dot_general(
        x_ref[...], w_ref[...], (((1,), (1,)), ((), ())),
        preferred_element_type=jnp.float32).astype(o_ref.dtype)


def _norm_matmul_hoisted_kernel(x_ref, g_ref, w_ref, o_ref, xn_ref, *, eps):
    # RMSNorm computed once per row tile (j == 0) into a bf16 scratch, reused over j.
    @pl.when(pl.program_id(1) == 0)
    def _():
        x = x_ref[...].astype(jnp.float32)
        var = jnp.mean(x * x, axis=-1, keepdims=True)
        xn_ref[...] = (x * jax.lax.rsqrt(var + eps) *
                       g_ref[...].astype(jnp.float32)).astype(BF16)

    o_ref[...] = jax.lax.dot_general(
        xn_ref[...], w_ref[...], (((1,), (1,)), ((), ())),
        preferred_element_type=jnp.float32).astype(o_ref.dtype)


def _norm_matmul_recompute_kernel(x_ref, g_ref, w_ref, o_ref, *, eps):
    # Decode-shaped path (single tiny row tile): recompute the cheap norm per tile so
    # both grid axes can stay "parallel" (keeps both v7x TensorCores busy).
    x = x_ref[...].astype(jnp.float32)
    var = jnp.mean(x * x, axis=-1, keepdims=True)
    xn = (x * jax.lax.rsqrt(var + eps) * g_ref[...].astype(jnp.float32)).astype(BF16)
    o_ref[...] = jax.lax.dot_general(
        xn, w_ref[...], (((1,), (1,)), ((), ())),
        preferred_element_type=jnp.float32).astype(o_ref.dtype)


def _fit_linear_tiles(m_pad, N, K, tm_cap, tn_cap, out_bytes):
    tn = _pick_div_tile(N, tn_cap, candidates=(512, 256, 128))
    tm = _pick_div_tile(m_pad, tm_cap)

    def est(tm_, tn_):
        return (2 * tm_ * K * 2          # x (double buffered, bf16)
                + 2 * tn_ * K * 2        # w (double buffered)
                + 2 * tm_ * tn_ * out_bytes
                + tm_ * K * 2)           # bf16 norm scratch

    while est(tm, tn) > _VMEM_BUDGET and tm > 64:
        tm = _pick_div_tile(m_pad, tm // 2)
    return tm, tn


def linear(x2d, w, *, norm_w=None, eps=1e-5, out_dtype=BF16, tm_cap=512, tn_cap=256):
    """x2d: (M, K) bf16, w: (N, K) bf16 (PyTorch layout). Optional fused RMSNorm."""
    M, K = x2d.shape
    N = w.shape[0]
    m_pad = _round_up(M, 16)
    x_p = _pad_rows(x2d, m_pad)
    out_bytes = jnp.dtype(out_dtype).itemsize
    tm, tn = _fit_linear_tiles(m_pad, N, K, tm_cap, tn_cap, out_bytes)
    gm, gn = m_pad // tm, N // tn
    grid = (gm, gn)

    x_spec = pl.BlockSpec((tm, K), lambda i, j: (i, 0))
    w_spec = pl.BlockSpec((tn, K), lambda i, j: (j, 0))
    o_spec = pl.BlockSpec((tm, tn), lambda i, j: (i, j))
    out_shape = jax.ShapeDtypeStruct((m_pad, N), out_dtype)
    cp_par = pltpu.CompilerParams(dimension_semantics=("parallel", "parallel"),
                                  vmem_limit_bytes=_VMEM_LIMIT)

    if norm_w is None:
        out = pl.pallas_call(
            _matmul_kernel, grid=grid,
            in_specs=[x_spec, w_spec], out_specs=o_spec,
            out_shape=out_shape, compiler_params=cp_par,
        )(x_p, w)
    elif gm == 1 and gn > 1:
        out = pl.pallas_call(
            functools.partial(_norm_matmul_recompute_kernel, eps=eps), grid=grid,
            in_specs=[x_spec, pl.BlockSpec((1, K), lambda i, j: (0, 0)), w_spec],
            out_specs=o_spec, out_shape=out_shape, compiler_params=cp_par,
        )(x_p, norm_w.reshape(1, K), w)
    else:
        out = pl.pallas_call(
            functools.partial(_norm_matmul_hoisted_kernel, eps=eps), grid=grid,
            in_specs=[x_spec, pl.BlockSpec((1, K), lambda i, j: (0, 0)), w_spec],
            out_specs=o_spec, out_shape=out_shape,
            scratch_shapes=[pltpu.VMEM((tm, K), BF16)],
            compiler_params=pltpu.CompilerParams(
                dimension_semantics=("parallel", "arbitrary"),
                vmem_limit_bytes=_VMEM_LIMIT),
        )(x_p, norm_w.reshape(1, K), w)
    return out[:M]


# ------------------------------ fused MLP ------------------------------------

def _mlp_kernel(x_ref, g_ref, wg_ref, wu_ref, wd_ref, o_ref, xn_ref, acc_ref, *, eps):
    j = pl.program_id(1)

    @pl.when(j == 0)
    def _():
        x = x_ref[...].astype(jnp.float32)                    # (tm, H)
        var = jnp.mean(x * x, axis=-1, keepdims=True)
        xn_ref[...] = (x * jax.lax.rsqrt(var + eps) *
                       g_ref[...].astype(jnp.float32)).astype(BF16)
        acc_ref[...] = jnp.zeros_like(acc_ref)

    xn = xn_ref[...]                                          # (tm, H) bf16, reused over j
    gate = jax.lax.dot_general(xn, wg_ref[...], (((1,), (1,)), ((), ())),
                               preferred_element_type=jnp.float32)   # (tm, ti)
    up = jax.lax.dot_general(xn, wu_ref[...], (((1,), (1,)), ((), ())),
                             preferred_element_type=jnp.float32)
    hidden = (gate * jax.lax.logistic(gate) * up).astype(BF16)        # swiglu
    acc_ref[...] += jax.lax.dot_general(hidden, wd_ref[...], (((1,), (1,)), ((), ())),
                                        preferred_element_type=jnp.float32)

    @pl.when(j == pl.num_programs(1) - 1)
    def _():
        o_ref[...] = acc_ref[...].astype(o_ref.dtype)


def _fit_mlp_tiles(m_pad, I, H, tm_cap, ti_cap):
    tm = _pick_div_tile(m_pad, tm_cap)
    ti = _pick_div_tile(I, ti_cap, candidates=(512, 256, 128))

    def est(tm_, ti_):
        return (2 * tm_ * H * 2          # x
                + 2 * 2 * ti_ * H * 2    # wg + wu (double buffered)
                + 2 * H * ti_ * 2        # wd
                + 2 * tm_ * H * 2        # out
                + tm_ * H * 2            # bf16 norm scratch
                + tm_ * H * 4)           # f32 accumulator

    while est(tm, ti) > _VMEM_BUDGET and ti > 128:
        ti = _pick_div_tile(I, ti // 2, candidates=(512, 256, 128))
    while est(tm, ti) > _VMEM_BUDGET and tm > 64:
        tm = _pick_div_tile(m_pad, tm // 2)
    return tm, ti


def fused_mlp(x2d, norm_w, w_gate, w_up, w_down, eps, *, tm_cap=512, ti_cap=512):
    """RMSNorm -> (gate, up) -> swiglu -> down, all in one kernel.
    x2d: (M, H); w_gate/w_up: (I, H); w_down: (H, I)  (PyTorch layouts)."""
    M, H = x2d.shape
    I = w_gate.shape[0]
    m_pad = _round_up(M, 16)
    x_p = _pad_rows(x2d, m_pad)
    tm, ti = _fit_mlp_tiles(m_pad, I, H, tm_cap, ti_cap)
    grid = (m_pad // tm, I // ti)

    out = pl.pallas_call(
        functools.partial(_mlp_kernel, eps=eps),
        grid=grid,
        in_specs=[
            pl.BlockSpec((tm, H), lambda i, j: (i, 0)),
            pl.BlockSpec((1, H), lambda i, j: (0, 0)),
            pl.BlockSpec((ti, H), lambda i, j: (j, 0)),
            pl.BlockSpec((ti, H), lambda i, j: (j, 0)),
            pl.BlockSpec((H, ti), lambda i, j: (0, j)),
        ],
        out_specs=pl.BlockSpec((tm, H), lambda i, j: (i, 0)),
        out_shape=jax.ShapeDtypeStruct((m_pad, H), BF16),
        scratch_shapes=[pltpu.VMEM((tm, H), BF16),
                        pltpu.VMEM((tm, H), jnp.float32)],
        compiler_params=pltpu.CompilerParams(
            dimension_semantics=("parallel", "arbitrary"),
            vmem_limit_bytes=_VMEM_LIMIT),
    )(x_p, norm_w.reshape(1, H), w_gate, w_up, w_down)
    return out[:M]


# --------------------------------- RoPE --------------------------------------
# TODO(synk): fuse RoPE into the QKV projection epilogue / attention prologue to
# remove this extra HBM round trip of Q and K per layer.

def _rope_kernel(q_ref, k_ref, cos_ref, sin_ref, qo_ref, ko_ref):
    c = cos_ref[...][None, None, :, :]            # (1, 1, ts, hd//2) f32
    s = sin_ref[...][None, None, :, :]

    def rot(x_ref, o_ref):
        x = x_ref[...].astype(jnp.float32)        # (1, heads, ts, hd)
        half = x.shape[-1] // 2
        x1 = x[..., :half]
        x2 = x[..., half:]
        o_ref[...] = jnp.concatenate([x1 * c - x2 * s, x2 * c + x1 * s],
                                     axis=-1).astype(o_ref.dtype)

    rot(q_ref, qo_ref)
    rot(k_ref, ko_ref)


def apply_rope(xq, xk, cos_h, sin_h):
    """xq: (B, nH, S_pad, hd), xk: (B, nKV, S_pad, hd) bf16 (head-major);
    cos_h/sin_h: (S_pad, hd//2) f32."""
    B, nH, s_pad, hd = xq.shape
    nKV = xk.shape[1]
    ts = _pick_div_tile(s_pad, 256, candidates=(256, 128, 64, 32, 16, 8))
    grid = (B, s_pad // ts)
    q_spec = pl.BlockSpec((1, nH, ts, hd), lambda b, i: (b, 0, i, 0))
    k_spec = pl.BlockSpec((1, nKV, ts, hd), lambda b, i: (b, 0, i, 0))
    cs_spec = pl.BlockSpec((ts, hd // 2), lambda b, i: (i, 0))
    qo, ko = pl.pallas_call(
        _rope_kernel, grid=grid,
        in_specs=[q_spec, k_spec, cs_spec, cs_spec],
        out_specs=[q_spec, k_spec],
        out_shape=(jax.ShapeDtypeStruct(xq.shape, BF16),
                   jax.ShapeDtypeStruct(xk.shape, BF16)),
        compiler_params=pltpu.CompilerParams(
            dimension_semantics=("parallel", "parallel")),
    )(xq, xk, cos_h, sin_h)
    return qo, ko


# --------------------------- flash attention ---------------------------------

def _flash_attn_kernel(start_ref, q_ref, k_ref, v_ref, o_ref, m_ref, l_ref, acc_ref,
                       *, scale, tq, blk, n_rep, hd):
    qi = pl.program_id(1)
    j = pl.program_id(2)
    start_pos = start_ref[0]
    # last KV block that intersects the causal region of this q tile.
    last_j = jnp.minimum((start_pos + (qi + 1) * tq - 1) // blk,
                         pl.num_programs(2) - 1)

    @pl.when(j == 0)
    def _():
        m_ref[...] = jnp.full_like(m_ref, -jnp.inf)
        l_ref[...] = jnp.zeros_like(l_ref)
        acc_ref[...] = jnp.zeros_like(acc_ref)

    @pl.when(j <= last_j)                         # skip fully-masked (future) blocks
    def _():
        # q block holds all n_rep heads of the KV group -> one big (n_rep*tq, hd) matmul
        # against the group's K/V block (KV streamed once per group, not per head).
        q = (q_ref[...].reshape(n_rep * tq, hd) * scale).astype(BF16)
        k = k_ref[0, 0]                           # (blk, hd) bf16
        v = v_ref[0, 0]

        s = jax.lax.dot_general(q, k, (((1,), (1,)), ((), ())),
                                preferred_element_type=jnp.float32)   # (n_rep*tq, blk)

        rows = jax.lax.broadcasted_iota(jnp.int32, s.shape, 0)
        cols = jax.lax.broadcasted_iota(jnp.int32, s.shape, 1)
        q_pos = start_pos + qi * tq + rows % tq   # row r -> query position (r % tq)
        k_pos = j * blk + cols
        s = jnp.where(k_pos <= q_pos, s, -1e30)

        m_prev = m_ref[...]
        m_new = jnp.maximum(m_prev, jnp.max(s, axis=-1, keepdims=True))
        alpha = jnp.exp(m_prev - m_new)
        p = jnp.exp(s - m_new)
        l_ref[...] = alpha * l_ref[...] + jnp.sum(p, axis=-1, keepdims=True)
        acc_ref[...] = alpha * acc_ref[...] + jnp.dot(
            p.astype(BF16), v, preferred_element_type=jnp.float32)
        m_ref[...] = m_new

    @pl.when(j == last_j)
    def _():
        o_ref[...] = (acc_ref[...] / l_ref[...]).reshape(
            1, n_rep, tq, hd).astype(o_ref.dtype)


def flash_attention(xq, cache_k, cache_v, *, start_pos, scale, n_rep,
                    tq_cap=256, blk_cap=512):
    """xq: (B, nH, S_pad, hd) bf16; cache_k/v: (B_max, nKV, T_max, hd) bf16.
    start_pos is passed as a scalar-prefetch value -> static shapes across decode."""
    B, nH, s_pad, hd = xq.shape
    nKV, t_max = cache_k.shape[1], cache_k.shape[2]
    tq = _pick_div_tile(s_pad, tq_cap, candidates=(256, 128, 64, 32, 16, 8))
    blk = _pick_div_tile(t_max, blk_cap, candidates=(512, 256, 128, 64, 32, 16, 8))
    grid = (B * nKV, s_pad // tq, t_max // blk)

    q_map = lambda h, qi, j, sp: (h // nKV, h % nKV, qi, 0)     # head-block = group
    kv_map = lambda h, qi, j, sp: (h // nKV, h % nKV, j, 0)

    out = pl.pallas_call(
        functools.partial(_flash_attn_kernel, scale=scale, tq=tq, blk=blk,
                          n_rep=n_rep, hd=hd),
        grid_spec=pltpu.PrefetchScalarGridSpec(
            num_scalar_prefetch=1,
            grid=grid,
            in_specs=[
                pl.BlockSpec((1, n_rep, tq, hd), q_map),
                pl.BlockSpec((1, 1, blk, hd), kv_map),
                pl.BlockSpec((1, 1, blk, hd), kv_map),
            ],
            out_specs=pl.BlockSpec((1, n_rep, tq, hd), q_map),
            scratch_shapes=[
                pltpu.VMEM((n_rep * tq, 1), jnp.float32),
                pltpu.VMEM((n_rep * tq, 1), jnp.float32),
                pltpu.VMEM((n_rep * tq, hd), jnp.float32),
            ]),
        out_shape=jax.ShapeDtypeStruct((B, nH, s_pad, hd), BF16),
        compiler_params=pltpu.CompilerParams(
            dimension_semantics=("parallel", "parallel", "arbitrary")),
    )(jnp.asarray([start_pos], jnp.int32), xq, cache_k, cache_v)
    return out


# ------------------------------ model (glue) ---------------------------------

def init_params(key, cfg):
    H = cfg['hidden_size']; I = cfg['intermediate_size']
    nH = cfg['n_heads']; nKV = cfg['n_kv_heads']; hd = H // nH
    V = cfg['vocab_size']; L = cfg['n_layers']
    std = 0.02
    ks = jax.random.split(key, 2 + 7 * L)

    def w(k, shape):
        return (jax.random.normal(k, shape, jnp.float32) * std).astype(BF16)

    params = {
        'embed': w(ks[0], (V, H)),
        'lm_head': w(ks[1], (V, H)),
        'norm_w': jnp.ones((H,), jnp.float32),
        'layers': [],
    }
    for l in range(L):
        kk = ks[2 + 7 * l: 2 + 7 * (l + 1)]
        wq = w(kk[0], (nH * hd, H))
        wk = w(kk[1], (nKV * hd, H))
        wv = w(kk[2], (nKV * hd, H))
        params['layers'].append({
            'attn_norm_w': jnp.ones((H,), jnp.float32),
            'ffn_norm_w': jnp.ones((H,), jnp.float32),
            'w_qkv': jnp.concatenate([wq, wk, wv], axis=0),   # fused once at init
            'wo': w(kk[3], (H, nH * hd)),
            'w_gate': w(kk[4], (I, H)),
            'w_up': w(kk[5], (I, H)),
            'w_down': w(kk[6], (H, I)),
        })
    return params


def init_caches(cfg):
    H = cfg['hidden_size']; nH = cfg['n_heads']; nKV = cfg['n_kv_heads']
    hd = H // nH
    t_max = _round_up(cfg['max_seq_len'], 8)
    # head-major cache layout: no full-cache transpose per layer.
    shape = (cfg['max_batch_size'], nKV, t_max, hd)
    return [(jnp.zeros(shape, BF16), jnp.zeros(shape, BF16))
            for _ in range(cfg['n_layers'])]


def llama_forward(params, caches, cfg, tokens, start_pos=0):
    """Returns (logits_f32, updated_caches)."""
    B, S = tokens.shape
    H = cfg['hidden_size']; nH = cfg['n_heads']; nKV = cfg['n_kv_heads']
    hd = H // nH
    n_rep = nH // nKV
    eps = cfg['rms_norm_eps']
    nq, nkv = nH * hd, nKV * hd
    scale = 1.0 / math.sqrt(hd)
    s_pad = _round_up(S, 16)

    # embedding gather — plain JAX glue (no dense Pallas equivalent).
    h = jnp.take(params['embed'], tokens, axis=0).astype(BF16)        # (B, S, H)

    # default RoPE tables (attention_scaling = 1.0), half-dim form, f32.
    pos = start_pos + jnp.arange(s_pad, dtype=jnp.float32)
    inv_freq = 1.0 / (cfg['rope_theta'] **
                      (jnp.arange(0, hd, 2, dtype=jnp.float32) / hd))
    freqs = pos[:, None] * inv_freq[None, :]                          # (s_pad, hd//2)
    cos_h, sin_h = jnp.cos(freqs), jnp.sin(freqs)

    def to_heads(x, nh):
        x = jnp.transpose(x, (0, 2, 1, 3))                            # (B, nh, S, hd)
        if s_pad != S:
            x = jnp.pad(x, ((0, 0), (0, 0), (0, s_pad - S), (0, 0)))
        return x

    new_caches = []
    for (cache_k, cache_v), lp in zip(caches, params['layers']):
        # --- attention block: fused rmsnorm + QKV projection ---
        x2d = h.reshape(B * S, H)
        qkv = linear(x2d, lp['w_qkv'], norm_w=lp['attn_norm_w'], eps=eps)
        xq = qkv[:, :nq].reshape(B, S, nH, hd)
        xk = qkv[:, nq:nq + nkv].reshape(B, S, nKV, hd)
        xv = qkv[:, nq + nkv:].reshape(B, S, nKV, hd)

        xq_h = to_heads(xq, nH)
        xk_h = to_heads(xk, nKV)
        xv_h = to_heads(xv, nKV)
        xq_h, xk_h = apply_rope(xq_h, xk_h, cos_h, sin_h)

        # head-major persistent bf16 KV cache update (new rows only).
        # TODO(synk): under jit with donated caches this becomes a true in-place update;
        # a Pallas cache-write kernel with input_output_aliases would do the same eagerly.
        cache_k = jax.lax.dynamic_update_slice(
            cache_k, xk_h[:, :, :S].astype(cache_k.dtype), (0, 0, start_pos, 0))
        cache_v = jax.lax.dynamic_update_slice(
            cache_v, xv_h[:, :, :S].astype(cache_v.dtype), (0, 0, start_pos, 0))
        new_caches.append((cache_k, cache_v))

        attn = flash_attention(xq_h, cache_k, cache_v, start_pos=start_pos,
                               scale=scale, n_rep=n_rep)
        attn2d = jnp.transpose(attn[:, :, :S], (0, 2, 1, 3)).reshape(B * S, nq)
        h = h + linear(attn2d, lp['wo']).reshape(B, S, H)

        # --- feed-forward block: fused rmsnorm + swiglu MLP ---
        mlp = fused_mlp(h.reshape(B * S, H), lp['ffn_norm_w'],
                        lp['w_gate'], lp['w_up'], lp['w_down'], eps)
        h = h + mlp.reshape(B, S, H)

    # final rmsnorm fused into the lm_head projection; logits kept in f32.
    logits = linear(h.reshape(B * S, H), params['lm_head'],
                    norm_w=params['norm_w'], eps=eps, out_dtype=jnp.float32)
    return logits.reshape(B, S, -1), new_caches


if __name__ == "__main__":
    cfg = dict(
        hidden_size=256,
        intermediate_size=512,
        n_heads=2,
        n_kv_heads=1,
        n_layers=2,
        vocab_size=512,
        max_batch_size=2,
        max_seq_len=32,
        rope_theta=10000.0,
        rms_norm_eps=1e-5,
    )
    key = jax.random.PRNGKey(0)
    pkey, tkey = jax.random.split(key)
    params = init_params(pkey, cfg)
    caches = init_caches(cfg)

    B, S = 2, 8
    tokens = jax.random.randint(tkey, (B, S), 0, cfg['vocab_size'], dtype=jnp.int32)

    # prefill
    logits, caches = llama_forward(params, caches, cfg, tokens, start_pos=0)
    logits = jax.block_until_ready(logits)
    assert logits.shape == (B, S, cfg['vocab_size'])
    assert logits.dtype == jnp.float32
    assert bool(jnp.all(jnp.isfinite(logits)))

    # one incremental decode step (start_pos > 0, reads the persistent KV cache)
    next_tok = jnp.argmax(logits[:, -1, :], axis=-1).astype(jnp.int32)[:, None]
    logits1, caches = llama_forward(params, caches, cfg, next_tok, start_pos=S)
    logits1 = jax.block_until_ready(logits1)
    assert logits1.shape == (B, 1, cfg['vocab_size'])
    assert bool(jnp.all(jnp.isfinite(logits1)))

    print("KERNEL_OK")
</pallas_src>

<mosaic_0001>
module attributes {stable_mosaic.version = 11 : i64} {
  func.func @_norm_matmul_recompute_kernel(%arg0: i32, %arg1: i32, %arg2: memref<16x256xbf16, #tpu.memory_space<vmem>>, %arg3: memref<1x256xf32, #tpu.memory_space<vmem>>, %arg4: memref<256x256xbf16, #tpu.memory_space<vmem>>, %arg5: memref<16x256xbf16, #tpu.memory_space<vmem>>) attributes {dimension_semantics = [#tpu.dimension_semantics<parallel>, #tpu.dimension_semantics<parallel>], iteration_bounds = array<i64: 1, 2>, scalar_prefetch = 0 : i64, scratch_operands = 0 : i64, tpu.core_type = #tpu.core_type<tc>, window_params = [{transform_indices = @transform_0, window_bounds = array<i64: 16, 256>}, {pipeline_mode = #tpu.pipeline_mode<synchronous>, transform_indices = @transform_1, window_bounds = array<i64: 1, 256>}, {transform_indices = @transform_2, window_bounds = array<i64: 256, 256>}, {transform_indices = @transform_3, window_bounds = array<i64: 16, 256>}]} {
    %c0 = arith.constant 0 : index
    %c0_0 = arith.constant 0 : index
    %0 = vector.load %arg2[%c0, %c0_0] : memref<16x256xbf16, #tpu.memory_space<vmem>>, vector<16x256xbf16>
    %1 = arith.extf %0 : vector<16x256xbf16> to vector<16x256xf32>
    %2 = arith.mulf %1, %1 : vector<16x256xf32>
    %cst = arith.constant dense<0.000000e+00> : vector<16xf32>
    %3 = vector.multi_reduction <add>, %2, %cst [1] : vector<16x256xf32> to vector<16xf32>
    %4 = vector.shape_cast %3 : vector<16xf32> to vector<16x1xf32>
    %cst_1 = arith.constant 2.560000e+02 : f32
    %5 = vector.broadcast %cst_1 : f32 to vector<16x1xf32>
    %6 = arith.divf %4, %5 : vector<16x1xf32>
    %cst_2 = arith.constant 9.99999974E-6 : f32
    %7 = vector.broadcast %cst_2 : f32 to vector<16x1xf32>
    %8 = arith.addf %6, %7 : vector<16x1xf32>
    %9 = math.rsqrt %8 : vector<16x1xf32>
    %10 = vector.broadcast %9 : vector<16x1xf32> to vector<16x256xf32>
    %11 = arith.mulf %1, %10 : vector<16x256xf32>
    %c0_3 = arith.constant 0 : index
    %c0_4 = arith.constant 0 : index
    %12 = vector.load %arg3[%c0_3, %c0_4] : memref<1x256xf32, #tpu.memory_space<vmem>>, vector<1x256xf32>
    %13 = vector.broadcast %12 : vector<1x256xf32> to vector<16x256xf32>
    %14 = arith.mulf %11, %13 : vector<16x256xf32>
    %15 = arith.truncf %14 : vector<16x256xf32> to vector<16x256xbf16>
    %c0_5 = arith.constant 0 : index
    %c0_6 = arith.constant 0 : index
    %16 = vector.load %arg4[%c0_5, %c0_6] : memref<256x256xbf16, #tpu.memory_space<vmem>>, vector<256x256xbf16>
    %cst_7 = arith.constant dense<0.000000e+00> : vector<16x256xf32>
    %17 = tpu.matmul %15, %16, %cst_7 {dimension_numbers = #tpu.dot_dimension_numbers<[1], [1], [0], [0], [0, 0, 1, 0], [], []>} : vector<16x256xbf16>, vector<256x256xbf16>, vector<16x256xf32> -> vector<16x256xf32>
    %18 = arith.truncf %17 : vector<16x256xf32> to vector<16x256xbf16>
    %c0_8 = arith.constant 0 : index
    %c0_9 = arith.constant 0 : index
    %19 = vector.load %arg5[%c0_8, %c0_9] : memref<16x256xbf16, #tpu.memory_space<vmem>>, vector<16x256xbf16>
    tpu.vector_store %arg5[%c0_8, %c0_9], %18 {strides = array<i32>} : memref<16x256xbf16, #tpu.memory_space<vmem>>, vector<16x256xbf16>,
    return
  }
  func.func @transform_0(%arg0: i32, %arg1: i32) -> (i32, i32) {
    %c0_i32 = arith.constant 0 : i32
    %c0_i32_0 = arith.constant 0 : i32
    return %arg0, %c0_i32 : i32, i32
  }
  func.func @transform_1(%arg0: i32, %arg1: i32) -> (i32, i32) {
    %c0_i32 = arith.constant 0 : i32
    %c0_i32_0 = arith.constant 0 : i32
    %c0_i32_1 = arith.constant 0 : i32
    return %c0_i32, %c0_i32_0 : i32, i32
  }
  func.func @transform_2(%arg0: i32, %arg1: i32) -> (i32, i32) {
    %c0_i32 = arith.constant 0 : i32
    %c0_i32_0 = arith.constant 0 : i32
    return %arg1, %c0_i32 : i32, i32
  }
  func.func @transform_3(%arg0: i32, %arg1: i32) -> (i32, i32) {
    %c0_i32 = arith.constant 0 : i32
    return %arg0, %arg1 : i32, i32
  }
}

</mosaic_0001>

<bundles_post_ra>
// kernel: tpu_custom_call.1
= control target key start
LH: loop header
LB: loop body
LE: loop exit
PB: predicated region body
PF: predicated region fallthrough
CT: control target
= control target key end

     0   :  { %s1423_s0 = inlined_call_operand.hbm [shape: bf16[16,256], index: 0, kind: input, shape index: {}]   ;;  %s1424_s1 = inlined_call_operand.hbm [shape: f32[1,256], index: 1, kind: input, shape index: {}]   ;;  %s1425_s2 = inlined_call_operand.hbm [shape: bf16[512,256], index: 2, kind: input, shape index: {}]   ;;  %s1426_s3 = inlined_call_operand.hbm [shape: bf16[16,512], index: 3, kind: output, shape index: {}]  }
   0x1   :  { %1429 = sst [smem:[#allocation13_spill]] %s1423_s0 }
   0x2   :  { %8 = vsyncpa [#allocation3], 0 }
   0x3   :  { %9 = vsyncpa [#allocation6], 0 }
   0x4   :  { %10 = vsyncpa [#allocation4], 0 }
   0x5   :  { %12 = vsyncpa [#allocation4 + $0x1], 0  ;;  %s1175_s12 = smov 0   ;;  %s1177_s13 = smov 0  }
   0x6   :  { %s1179_s14 = smov 0   ;;  %s1181_s15 = smov 0  }
   0x7   :  { %s1183_s16 = smov 0   ;;  %s1185_s17 = smov 0  }
   0x8 LB: > { %s1206_s18 = sadd.s32 4294967295, %s1145_s17   ;;  %s688_s19 = sadd.s32 4294967294, %s1145_s17   ;;  %s1145_s17 = sphi %s1185_s17, %s18_s17   ;;  %s1141_s16 = sphi %s1183_s16, %s1442_s16   ;;  %s1137_s15 = sphi %s1181_s15, %s1441_s15   ;;  %s1133_s14 = sphi %s1179_s14, %s1440_s14   ;;  %s1129_s13 = sphi %s1177_s13, %s1439_s13   ;;  %s1125_s12 = sphi %s1175_s12, %s1438_s12  }
   0x9   : > { %p97_p0 = scmp.ne.s32.totalorder %s1129_s13, %s1125_s12  ;;  %p98_p1 = scmp.eq.s32.totalorder %s1206_s18, 0 }
   0xa   : > { %p123_p2 = scmp.eq.s32.totalorder %s1206_s18, 1  ;;  %p129_p3 = scmp.eq.s32.totalorder %s688_s19, 1 }
   0xb   : > { %p1215_p4 = por %p98_p1, %p97_p0  ;;  %p689_p5 = scmp.ge.s32.totalorder %s1145_s17, 1 }
   0xc   : > { %p1220_p6 = por %p129_p3, %p97_p0  ;;  %p136_p7 = scmp.lt.s32.totalorder %s1145_s17, 3 }
   0xd   : > { %s1432_s0 = sld [smem:[#allocation13_spill]]  ;;  %s1147_s26 = smov [#allocation2]  }
   0xe   : > { %p1228_p8 = pnand %p689_p5, %p136_p7  ;;  %s153_s27 = sshll.u32 %s1147_s26, 4  ;;  %s154_s27 = int_to_ptr.vmem [resolvable:$true] %s153_s27 }
   0xf   : > { %p692_p11 = scmp.ge.s32.totalorder %s1145_s17, 2  ;;  %s166_s30 = sshll.u32 %s1424_s1, 4  ;;  %s167_s30 = int_to_ptr.hbm [resolvable:$true] %s166_s30 }
  0x10   : > { %p882_p9 = pneg %p1228_p8  ;;  %s1427_s4 = smov 128  }
  0x11   : > { %s1428_s5 = smov 8   ;;  %s1150_s6 = smov [#allocation5]  }
  0x12   : > { %p883_p10 = pnand %p882_p9, %p98_p1  ;;  %s168_s7 = sshll.u32 %s1150_s6, 4  ;;  %s169_s7 = int_to_ptr.vmem [resolvable:$true] %s168_s7 }
  0x13   : > { %s151_s24 = sshll.u32 %s1432_s0, 4  ;;  %s27_s8 = sadd.s32 1, %s1141_s16  ;;  %s152_s24 = int_to_ptr.hbm [resolvable:$true] %s151_s24 }
  0x14   : > { %885 = dma.hbm_to_vmem [thread:$0]  (!%p883_p10), %s152_s24, 256, %s154_s27, [#allocation3], %s1427_s4, %s1427_s4, %s1428_s5  }
  0x15   : > { %888 = dma.hbm_to_vmem [thread:$0]  (!%p883_p10), %s167_s30, 32, %s169_s7, [#allocation6]  }
  0x16   : > { %s84_s9 = sadd.s32 1, %s1133_s14  ;;  %p28_p12 = scmp.ge.s32.totalorder %s27_s8, 2 }
  0x17   : > { %p91_p13 = scmp.ne.s32.totalorder %s1133_s14, %s1129_s13  ;;  %p92_p0 = scmp.eq.s32.totalorder %s1145_s17, 0 }
  0x18   : > { %p899_p3 = scmp.lt.s32.totalorder %s1145_s17, 2  ;;  %s1444_s8 = smov (%p28_p12, %s27_s8), 0 }
  0x19   : > { %p1251_p5 = por %p92_p0, %p91_p13  ;;  %p1257_p7 = por %p123_p2, %p91_p13 }
  0x1a   : > { %s81_s19 = ssub.s32 %s1141_s16, %s1444_s8  ;;  %s179_s22 = sand.u32 1, %s1145_s17  }
  0x1b   : > { %p82_p9 = scmp.eq.s32.totalorder %s81_s19, 0  ;;  %s181_s23 = sand.u32 1, %s1133_s14  }
  0x1c   : > { %s836_s24 = sshll.u32 %s1141_s16, 8  ;;  %s693_s27 = sshll.u32 %s181_s23, 8 }
  0x1d   : > { %s1267_s26 = scalar_select %p82_p9, %s1133_s14, %s84_s9  }
  0x1e   : > { %s189_s30 = scalar_lea.hbm %s1425_s2, %s836_s24  ;;  %s183_s7 = scalar_lea.vmem [#allocation7], %s693_s27 }
  0x1f   : > { %s190_s6 = sshll.u32 %s189_s30, 4  ;;  %s192_s4 = sshll.u32 %s183_s7, 4  ;;  %s191_s6 = int_to_ptr.hbm [resolvable:$true] %s190_s6  ;;  %s193_s4 = int_to_ptr.vmem [resolvable:$true] %s192_s4 }
  0x20   : > { %p890_p2 = pnand %p899_p3, %p1251_p5  ;;  %s180_s5 = scalar_lea.sflag [#allocation3], %s179_s22 }
  0x21   : > { %s1436_s0 = smov 8   ;;  %s1437_s19 = smov 128  }
  0x22   : > { %892 = dma.hbm_to_vmem [thread:$0]  (!%p890_p2), %s191_s6, 4096, %s193_s4, %s180_s5, %s1437_s19, %s1437_s19, %s1436_s0  }
  0x23   : > { %204 = sbr.rel (%p1228_p8) target bundleno = 356 (0x164), region = 32 }
  0x28   : > { %1108 = dma.done.wait (%p98_p1), [#allocation3], 256  }
  0x29   : > { %1110 = vsyncadd (%p98_p1), [#allocation3], 4294967040 }
  0x2a   : > { %1112 = dma.done.wait (%p98_p1), [#allocation6], 32  }
  0x2b   : > { %1114 = vsyncadd (%p98_p1), [#allocation6], 4294967264  ;;  %s216_s9 = sand.u32 1, %s1206_s18   ;;  %s1291_s0 = sand.u32 1, %s1129_s13  }
  0x2c   : > { %s700_s25 = sshll.u32 %s1291_s0, 8  ;;  %s217_s4 = scalar_lea.sflag [#allocation3], %s216_s9 }
  0x2d   : > { %s1294_s5 = scalar_lea.vmem [#allocation7], %s700_s25 }
  0x2e   : > { %1116 = dma.done.wait (%p1215_p4), %s217_s4, 4096  }
  0x2f   : > { %1118 = vsyncadd (%p1215_p4), %s217_s4, 4294963200  ;;  %v248_v0 = vld [vmem:[#allocation2] sm:$0xff]  ;;  %v249_v1 = vld [vmem:[#allocation2 + $0x8] sm:$0xff]  ;;  %s701_s18 = sshll.u32 %s1291_s0, 4  ;;  %s869_s20 = sshll.u32 %s1137_s15, 3 }
  0x30   : > { %v760_v2 = vld [vmem:[%s1294_s5 + $0x70] sm:$0xf]  ;;  %v1301_v3 = vunpack.c.l.bf16 %v248_v0  ;;  %v1303_v4 = vunpack.c.h.bf16 %v248_v0  ;;  %v852_v5 = vld [vmem:[%s1294_s5 + $0x74] sm:$0xf0]  ;;  %v851_v6 = vld [vmem:[%s1294_s5 + $0x74] sm:$0xf]  ;;  %v1315_v15 = vunpack.c.l.bf16 %v249_v1  ;;  %v1317_v16 = vunpack.c.h.bf16 %v249_v1  ;;  %s578_s23 = scalar_lea.hbm %s1426_s3, %s869_s20 }
  0x31   : > { %v762_v7 = vld [vmem:[%s1294_s5 + $0x78] sm:$0xf0]  ;;  %v761_v8 = vor.u32 %v852_v5, %v760_v2  ;;  %v824_v10 = vld [vmem:[%s1294_s5 + $0xf0] sm:$0xf]  ;;  %v868_v11 = vld [vmem:[%s1294_s5 + $0xf4] sm:$0xf0] }
  0x32   : > { %v765_v9 = vor.u32 %v851_v6, %v762_v7  ;;  %v867_v12 = vld [vmem:[%s1294_s5 + $0xf4] sm:$0xf]  ;;  %v254_v13 = vmul.f32 %v1301_v3, %v1301_v3  ;;  %v255_v14 = vmul.f32 %v1303_v4, %v1303_v4  ;;  %v826_v17 = vld [vmem:[%s1294_s5 + $0xf8] sm:$0xf0]  ;;  %v825_v18 = vor.u32 %v868_v11, %v824_v10  ;;  %v752_v20 = vld [vmem:[%s1294_s5 + $0x60] sm:$0xf] }
  0x33   : > { %503 = vmatpush.bf16.xpose.msra.mxu0 %v761_v8  ;;  %v829_v19 = vor.u32 %v867_v12, %v826_v17  ;;  %v850_v22 = vld [vmem:[%s1294_s5 + $0x64] sm:$0xf0]  ;;  %v849_v23 = vld [vmem:[%s1294_s5 + $0x64] sm:$0xf]  ;;  %v754_v24 = vld [vmem:[%s1294_s5 + $0x68] sm:$0xf0]  ;;  %v256_v26 = vmul.f32 %v1315_v15, %v1315_v15  ;;  %v257_v27 = vmul.f32 %v1317_v16, %v1317_v16 }
  0x34   : > { %517 = vmatpush.bf16.xpose.msra.mxu1 %v765_v9  ;;  %v258_v21 = vadd.f32 %v255_v14, %v254_v13  ;;  %531 = vmatpush.bf16.xpose.msra.mxu2 %v825_v18  ;;  %v816_v25 = vld [vmem:[%s1294_s5 + $0xe0] sm:$0xf]  ;;  %v866_v28 = vld [vmem:[%s1294_s5 + $0xe4] sm:$0xf0]  ;;  %v865_v29 = vld [vmem:[%s1294_s5 + $0xe4] sm:$0xf]  ;;  %v753_v31 = vor.u32 %v850_v22, %v752_v20  ;;  %v757_v32 = vor.u32 %v849_v23, %v754_v24 }
  0x35   : > { %545 = vmatpush.bf16.xpose.msra.mxu3 %v829_v19  ;;  %v818_v30 = vld [vmem:[%s1294_s5 + $0xe8] sm:$0xf0]  ;;  %v817_v33 = vor.u32 %v866_v28, %v816_v25  ;;  %v261_v35 = vadd.f32 %v257_v27, %v256_v26  ;;  %v744_v36 = vld [vmem:[%s1294_s5 + $0x50] sm:$0xf]  ;;  %v848_v37 = vld [vmem:[%s1294_s5 + $0x54] sm:$0xf0] }
  0x36   : > { %259 = vadd.xlane.f32.xlu0 %v258_v21  ;;  %v821_v34 = vor.u32 %v865_v29, %v818_v30  ;;  %v847_v38 = vld [vmem:[%s1294_s5 + $0x54] sm:$0xf]  ;;  %v746_v39 = vld [vmem:[%s1294_s5 + $0x58] sm:$0xf0]  ;;  %v808_v40 = vld [vmem:[%s1294_s5 + $0xd0] sm:$0xf]  ;;  %v745_v44 = vor.u32 %v848_v37, %v744_v36 }
  0x37   : > { %v864_v41 = vld [vmem:[%s1294_s5 + $0xd4] sm:$0xf0]  ;;  %v863_v42 = vld [vmem:[%s1294_s5 + $0xd4] sm:$0xf]  ;;  %v810_v43 = vld [vmem:[%s1294_s5 + $0xd8] sm:$0xf0]  ;;  %v749_v45 = vor.u32 %v847_v38, %v746_v39 }
  0x38   : > { %v809_v46 = vor.u32 %v864_v41, %v808_v40  ;;  %v813_v47 = vor.u32 %v863_v42, %v810_v43  ;;  %v736_v48 = vld [vmem:[%s1294_s5 + $0x40] sm:$0xf]  ;;  %v846_v49 = vld [vmem:[%s1294_s5 + $0x44] sm:$0xf0]  ;;  %v845_v50 = vld [vmem:[%s1294_s5 + $0x44] sm:$0xf] }
  0x39   : > { %v738_v51 = vld [vmem:[%s1294_s5 + $0x48] sm:$0xf0]  ;;  %v800_v52 = vld [vmem:[%s1294_s5 + $0xc0] sm:$0xf]  ;;  %v862_v53 = vld [vmem:[%s1294_s5 + $0xc4] sm:$0xf0]  ;;  %v737_v56 = vor.u32 %v846_v49, %v736_v48 }
  0x3a   : > { %v861_v54 = vld [vmem:[%s1294_s5 + $0xc4] sm:$0xf]  ;;  %v802_v55 = vld [vmem:[%s1294_s5 + $0xc8] sm:$0xf0]  ;;  %v741_v57 = vor.u32 %v845_v50, %v738_v51  ;;  %v801_v58 = vor.u32 %v862_v53, %v800_v52  ;;  %v728_v60 = vld [vmem:[%s1294_s5 + $0x30] sm:$0xf] }
  0x3b   : > { %504 = vmatpush.bf16.xpose.msra.mxu0 %v753_v31  ;;  %v805_v59 = vor.u32 %v861_v54, %v802_v55  ;;  %v844_v61 = vld [vmem:[%s1294_s5 + $0x34] sm:$0xf0]  ;;  %v843_v62 = vld [vmem:[%s1294_s5 + $0x34] sm:$0xf]  ;;  %v730_v0 = vld [vmem:[%s1294_s5 + $0x38] sm:$0xf0] }
  0x3c   : > { %518 = vmatpush.bf16.xpose.msra.mxu1 %v757_v32  ;;  %532 = vmatpush.bf16.xpose.msra.mxu2 %v817_v33  ;;  %v729_v63 = vor.u32 %v844_v61, %v728_v60  ;;  %v792_v1 = vld [vmem:[%s1294_s5 + $0xb0] sm:$0xf]  ;;  %v860_v2 = vld [vmem:[%s1294_s5 + $0xb4] sm:$0xf0]  ;;  %v1151_v5 = vmov 256.0   ;;  %v733_v6 = vor.u32 %v843_v62, %v730_v0  ;;  %s243_s24 = scalar_lea.vmem [#allocation8], %s701_s18 }
  0x3d   : > { %546 = vmatpush.bf16.xpose.msra.mxu3 %v821_v34  ;;  %959 = vrcp.f32 %v1151_v5  ;;  %v793_v7 = vor.u32 %v860_v2, %v792_v1  ;;  %v859_v8 = vld [vmem:[%s1294_s5 + $0xb4] sm:$0xf]  ;;  %v794_v9 = vld [vmem:[%s1294_s5 + $0xb8] sm:$0xf0]  ;;  %v720_v12 = vld [vmem:[%s1294_s5 + $0x20] sm:$0xf] }
  0x3e   : > { %262 = vadd.xlane.f32.xlu0 %v261_v35  ;;  %v797_v10 = vor.u32 %v859_v8, %v794_v9  ;;  %v842_v13 = vld [vmem:[%s1294_s5 + $0x24] sm:$0xf0]  ;;  %v841_v14 = vld [vmem:[%s1294_s5 + $0x24] sm:$0xf]  ;;  %v722_v18 = vld [vmem:[%s1294_s5 + $0x28] sm:$0xf0] }
  0x3f   : > { %v721_v17 = vor.u32 %v842_v13, %v720_v12  ;;  %v784_v19 = vld [vmem:[%s1294_s5 + $0xa0] sm:$0xf]  ;;  %v858_v20 = vld [vmem:[%s1294_s5 + $0xa4] sm:$0xf0]  ;;  %v725_v21 = vor.u32 %v841_v14, %v722_v18  ;;  %v857_v23 = vld [vmem:[%s1294_s5 + $0xa4] sm:$0xf] }
  0x40   : > { %v785_v22 = vor.u32 %v858_v20, %v784_v19  ;;  %v786_v24 = vld [vmem:[%s1294_s5 + $0xa8] sm:$0xf0]  ;;  %v712_v28 = vld [vmem:[%s1294_s5 + $0x10] sm:$0xf]  ;;  %v840_v29 = vld [vmem:[%s1294_s5 + $0x14] sm:$0xf0] }
  0x41   : > { %v789_v26 = vor.u32 %v857_v23, %v786_v24  ;;  %v839_v30 = vld [vmem:[%s1294_s5 + $0x14] sm:$0xf]  ;;  %v713_v31 = vor.u32 %v840_v29, %v712_v28  ;;  %v714_v32 = vld [vmem:[%s1294_s5 + $0x18] sm:$0xf0]  ;;  %v776_v33 = vld [vmem:[%s1294_s5 + $0x90] sm:$0xf] }
  0x42   : > { %v856_v34 = vld [vmem:[%s1294_s5 + $0x94] sm:$0xf0]  ;;  %v717_v35 = vor.u32 %v839_v30, %v714_v32  ;;  %v855_v37 = vld [vmem:[%s1294_s5 + $0x94] sm:$0xf]  ;;  %v778_v38 = vld [vmem:[%s1294_s5 + $0x98] sm:$0xf0] }
  0x43   : > { %505 = vmatpush.bf16.xpose.msra.mxu0 %v745_v44  ;;  %v960_v11 = vpop.eup %959  ;;  %v777_v36 = vor.u32 %v856_v34, %v776_v33  ;;  %v781_v40 = vor.u32 %v855_v37, %v778_v38  ;;  %v704_v42 = vld [vmem:[%s1294_s5] sm:$0xf]  ;;  %v838_v43 = vld [vmem:[%s1294_s5 + $0x4] sm:$0xf0]  ;;  %v837_v44 = vld [vmem:[%s1294_s5 + $0x4] sm:$0xf] }
  0x44   : > { %519 = vmatpush.bf16.xpose.msra.mxu1 %v749_v45  ;;  %533 = vmatpush.bf16.xpose.msra.mxu2 %v809_v46  ;;  %v265_v25 = vmul.f32 256.0, %v960_v11  ;;  %vm269_vm0 = vweird.f32 %v960_v11  ;;  %v705_v45 = vor.u32 %v838_v43, %v704_v42  ;;  %v706_v46 = vld [vmem:[%s1294_s5 + $0x8] sm:$0xf0]  ;;  %v854_v48 = vld [vmem:[%s1294_s5 + $0x84] sm:$0xf0]  ;;  %s579_s27 = sshll.u32 %s243_s24, 4  ;;  %s580_s27 = int_to_ptr.vmem [resolvable:$true] %s579_s27 }
  0x45   : > { %547 = vmatpush.bf16.xpose.msra.mxu3 %v813_v47  ;;  %v768_v47 = vld [vmem:[%s1294_s5 + $0x80] sm:$0xf]  ;;  %v709_v49 = vor.u32 %v837_v44, %v706_v46  ;;  %v853_v51 = vld [vmem:[%s1294_s5 + $0x84] sm:$0xf]  ;;  %v770_v52 = vld [vmem:[%s1294_s5 + $0x88] sm:$0xf0] }
  0x46   : > { %v266_v27 = vsub.f32 1.0, %v265_v25  ;;  %v769_v50 = vor.u32 %v854_v48, %v768_v47  ;;  %v773_v54 = vor.u32 %v853_v51, %v770_v52  ;;  %s581_s28 = sshll.u32 %s578_s23, 4  ;;  %s564_s15 = scalar_lea.sflag [#allocation4], %s1291_s0  ;;  %s582_s28 = int_to_ptr.hbm [resolvable:$true] %s581_s28 }
  0x47   : > { %s1069_s29 = sshra.s32 %s582_s28, 4  ;;  %s1075_s19 = scalar_lea.hbm %s1426_s3, 32  ;;  %s1070_s29 = int_to_ptr.hbm [resolvable:$true] %s1069_s29 }
  0x48   : > { %v267_v39 = vmul.f32 %v960_v11, %v266_v27  ;;  %s1071_s30 = scalar_lea.hbm %s1070_s29, 16  ;;  %p1076_p10 = scmp.lt.s32.totalorder %s1070_s29, %s1426_s3 }
  0x49   : > { %p1072_p1 = scmp.ne.s32.totalorder %s1070_s29, %s1071_s30  ;;  %p1077_p12 = scmp.lt.s32.totalorder %s1075_s19, %s1071_s30 }
  0x4a   : > { %v268_v41 = vadd.f32 %v960_v11, %v267_v39 }
  0x4b   : > { %506 = vmatpush.bf16.xpose.msra.mxu0 %v737_v56  ;;  %p1073_p4 = pnand %p1072_p1, %p1257_p7  ;;  %p1078_p13 = por %p1077_p12, %p1076_p10 }
  0x4c   : > { %520 = vmatpush.bf16.xpose.msra.mxu1 %v741_v57  ;;  %534 = vmatpush.bf16.xpose.msra.mxu2 %v801_v58  ;;  %v270_v53 = vsel %vm269_vm0, %v960_v11, %v268_v41  ;;  %v299_v11 = vld [vmem:[#allocation5] sm:$0x3] }
  0x4d   : > { %548 = vmatpush.bf16.xpose.msra.mxu3 %v805_v59  ;;  %v301_v14 = vperm.slane %v299_v11, 0  ;;  %v302_v18 = vperm.slane %v299_v11, 1  ;;  %p1074_p8 = pneg %p1073_p4 }
  0x4f   : > { %p1079_p0 = pnand %p1078_p13, %p1074_p8 }
  0x53   : > { %507 = vmatpush.bf16.xpose.msra.mxu0 %v729_v63 }
  0x54   : > { %521 = vmatpush.bf16.xpose.msra.mxu1 %v733_v6  ;;  %535 = vmatpush.bf16.xpose.msra.mxu2 %v793_v7 }
  0x55   : > { %549 = vmatpush.bf16.xpose.msra.mxu3 %v797_v10 }
  0x5b   : > { %508 = vmatpush.bf16.xpose.msra.mxu0 %v721_v17 }
  0x5c   : > { %522 = vmatpush.bf16.xpose.msra.mxu1 %v725_v21  ;;  %536 = vmatpush.bf16.xpose.msra.mxu2 %v785_v22 }
  0x5d   : > { %550 = vmatpush.bf16.xpose.msra.mxu3 %v789_v26 }
  0x63   : > { %509 = vmatpush.bf16.xpose.msra.mxu0 %v713_v31 }
  0x64   : > { %523 = vmatpush.bf16.xpose.msra.mxu1 %v717_v35  ;;  %537 = vmatpush.bf16.xpose.msra.mxu2 %v777_v36 }
  0x65   : > { %551 = vmatpush.bf16.xpose.msra.mxu3 %v781_v40 }
  0x6b   : > { %510 = vmatpush.bf16.xpose.msra.mxu0 %v705_v45 }
  0x6c   : > { %524 = vmatpush.bf16.xpose.msra.mxu1 %v709_v49  ;;  %538 = vmatpush.bf16.xpose.msra.mxu2 %v769_v50 }
  0x6d   : > { %552 = vmatpush.bf16.xpose.msra.mxu3 %v773_v54 }
  0xa9   : > { %v260_v55 = vpop.xlane.xlu0 %259 }
  0xaa   : > { %v271_v56 = vmul.f32 %v270_v53, %v260_v55 }
  0xac   : > { %v273_v57 = vadd.f32 1e-05, %v271_v56 }
  0xae   : > { %961 = vrsqrt.f32 %v273_v57  ;;  %vm281_vm2 = vweird.f32 %v273_v57 }
  0xb1   : > { %v263_v58 = vpop.xlane.xlu0 %262 }
  0xb2   : > { %v272_v59 = vmul.f32 %v270_v53, %v263_v58 }
  0xb4   : > { %v962_v60 = vpop.eup %961  ;;  %v274_v61 = vadd.f32 1e-05, %v272_v59 }
  0xb5   : > { %v276_v62 = vmul.f32 %v962_v60, %v273_v57  ;;  %vm282_vm1 = vweird.f32 %v962_v60 }
  0xb6   : > { %963 = vrsqrt.f32 %v274_v61  ;;  %vm283_vm3 = vmor %vm281_vm2, %vm282_vm1  ;;  %vm291_vm5 = vweird.f32 %v274_v61 }
  0xb7   : > { %v277_v63 = vmul.f32 %v962_v60, %v276_v62 }
  0xb9   : > { %v278_v0 = vmul.f32 0.5, %v277_v63 }
  0xbb   : > { %v279_v1 = vsub.f32 1.5, %v278_v0 }
  0xbc   : > { %v964_v2 = vpop.eup %963 }
  0xbd   : > { %v286_v5 = vmul.f32 %v964_v2, %v274_v61  ;;  %v280_v6 = vmul.f32 %v962_v60, %v279_v1  ;;  %vm292_vm4 = vweird.f32 %v964_v2 }
  0xbe   : > { %vm293_vm6 = vmor %vm291_vm5, %vm292_vm4 }
  0xbf   : > { %v287_v7 = vmul.f32 %v964_v2, %v286_v5  ;;  %v284_v10 = vsel %vm283_vm3, %v962_v60, %v280_v6 }
  0xc0   : > { %v295_v13 = vmul.f32 %v284_v10, %v1301_v3  ;;  %v296_v17 = vmul.f32 %v284_v10, %v1303_v4 }
  0xc1   : > { %v288_v8 = vmul.f32 0.5, %v287_v7 }
  0xc2   : > { %v305_v22 = vmul.f32 %v301_v14, %v295_v13  ;;  %v306_v24 = vmul.f32 %v302_v18, %v296_v17 }
  0xc3   : > { %v289_v9 = vsub.f32 1.5, %v288_v8 }
  0xc5   : > { %v290_v12 = vmul.f32 %v964_v2, %v289_v9 }
  0xc7   : > { %v294_v19 = vsel %vm293_vm6, %v964_v2, %v290_v12 }
  0xc8   : > { %v297_v20 = vmul.f32 %v294_v19, %v1315_v15  ;;  %v298_v21 = vmul.f32 %v294_v19, %v1317_v16 }
  0xca   : > { %v307_v23 = vmul.f32 %v301_v14, %v297_v20  ;;  %v308_v25 = vmul.f32 %v302_v18, %v298_v21 }
  0xcc   : > { %v309_v26 = vpack.c.bf16 %v307_v23, %v305_v22  ;;  %v310_v27 = vpack.c.bf16 %v308_v25, %v306_v24 }
  0xce   : > { %511 = vmatmul.bf16.vlgmr.msra.gmra.mxu0 %v309_v26  ;;  %525 = vmatmul.bf16.vlgmr.msra.gmra.mxu1 %v310_v27 }
  0xcf   : > { %539 = vmatmul.bf16.vlgmr.msra.gmra.mxu2 %v309_v26  ;;  %553 = vmatmul.bf16.vlgmr.msra.gmra.mxu3 %v310_v27 }
 0x14b   : > { %v512_v3 = vpop.f32.mrf.mxu0  ;;  %v526_v4 = vpop.f32.mrf.mxu1 }
 0x14c   : > { %v527_v30 = vadd.f32 %v526_v4, %v512_v3 }
 0x152   : > { %v540_v28 = vpop.f32.mrf.mxu2  ;;  %v554_v29 = vpop.f32.mrf.mxu3 }
 0x153   : > { %v555_v15 = vadd.f32 %v554_v29, %v540_v28  ;;  %v514_v31 = vpop.f32.mrf.mxu0  ;;  %v528_v32 = vpop.f32.mrf.mxu1 }
 0x154   : > { %v529_v35 = vadd.f32 %v528_v32, %v514_v31 }
 0x155   : > { %v559_v16 = vpack.c.bf16 %v555_v15, %v527_v30 }
 0x157   : > { %561 = vst [vmem:[%s243_s24] sm:$0xff] %v559_v16 }
 0x15a   : > { %v542_v33 = vpop.f32.mrf.mxu2  ;;  %v556_v34 = vpop.f32.mrf.mxu3 }
 0x15b   : > { %v557_v36 = vadd.f32 %v556_v34, %v542_v33 }
 0x15d   : > { %v560_v37 = vpack.c.bf16 %v557_v36, %v529_v35 }
 0x15f   : > { %562 = vst [vmem:[%s243_s24 + $0x8] sm:$0xff] %v560_v37 }
 0x160   : > { %1082 = shalt.err (!%p1079_p0)
}
 0x161   : > { %s1152_s0 = smov 128   ;;  %s1153_s4 = smov 256  }
 0x162   : > { %s1154_s5 = smov 8  }
 0x163   : > { %880 = dma.vmem_to_hbm [thread:$0]  (%p1257_p7), %s580_s27, 256, %s582_s28, %s564_s15, %s1152_s0, %s1153_s4, %s1154_s5  }
 0x164 PF: > { %s596_s18 = sand.u32 1, %s1125_s12   ;;  %p894_p3 = pnand %p692_p11, %p1220_p6 }
 0x165   : > { %s597_s20 = scalar_lea.sflag [#allocation4], %s596_s18 }
 0x166   : > { %p895_p5 = pneg %p894_p3 }
 0x168   : > { %1120 = dma.done.wait (%p895_p5), %s597_s20, 256  }
 0x169   : > { %1122 = vsyncadd (%p895_p5), %s597_s20, 4294967040  ;;  %s18_s17 = sadd.s32 1, %s1145_s17   ;;  %s1438_s12 = smov %s1129_s13 }
 0x16a   : > { %p15_p9 = scmp.ge.s32.totalorder %s18_s17, 4   ;;  %s1439_s13 = smov %s1133_s14 }
 0x16b   : > { %s1440_s14 = smov %s1267_s26  ;;  %s1441_s15 = smov %s1141_s16 }
 0x16c   : > { %s1442_s16 = smov %s1444_s8  ;;  %17 = sbr.rel (!%p15_p9) target bundleno = 8 (0x8), region = 85 }
 0x171   :  { %603 = vsyncpa [#allocation3], 1 }
 0x172   :  { %605 = vsyncpa [#allocation3 + $0x1], 1 }
 0x173   :  { %606 = vsyncpa [#allocation6], 1 }
 0x174   :  { %607 = vsyncpa [#allocation4], 1 }
 0x175   :  { %609 = vsyncpa [#allocation4 + $0x1], 1 }

</bundles_post_ra>
